<compile_context>
chip_gen: v7x
topology: tpu7x:2x2x1
jax: 0.10.0
libtpu: 0.0.40
codegen_flags: <defaults>
</compile_context>

<pallas_src>
import functools

import numpy as np
import jax
import jax.numpy as jnp
from jax import lax
from jax.experimental import pallas as pl
from jax.experimental.pallas import tpu as pltpu

NEG_SLOPE = 0.01   # nn.LeakyReLU default
EPS = 1e-5         # nn.InstanceNorm2d default

_TAPS = [(dy, dx) for dy in (-1, 0, 1) for dx in (-1, 0, 1)]


def _round_up(v, m):
    return (v + m - 1) // m * m


def _leaky_relu(v):
    return jnp.where(v > 0, v, NEG_SLOPE * v)


def _instance_norm(v):
    # v: (C, HW); per-channel normalization over the spatial (lane) axis,
    # biased variance, centered two-pass form for numerical stability.
    mu = jnp.mean(v, axis=1, keepdims=True)
    d = v - mu
    var = jnp.mean(d * d, axis=1, keepdims=True)
    return d * lax.rsqrt(var + EPS)


@functools.lru_cache(maxsize=None)
def _roll_sign():
    """Portability guard: +1 if pltpu.roll follows jnp.roll semantics
    (out[i] = x[i - shift]), -1 if the rotation direction is inverted."""
    def k(x_ref, o_ref):
        o_ref[...] = pltpu.roll(x_ref[...], 1, axis=1)

    x = jnp.tile(jnp.arange(128, dtype=jnp.float32)[None, :], (8, 1))
    y = pl.pallas_call(k, out_shape=jax.ShapeDtypeStruct((8, 128), jnp.float32))(x)
    return 1 if int(y[0, 0]) == 127 else -1


def _make_masks(H, W):
    """8 border masks (center tap is None), each (1, HW) bool.  Built once per
    kernel invocation and shared by both convs and all Nb images."""
    HW = H * W
    pos = lax.broadcasted_iota(jnp.int32, (1, HW), 1)
    row = pos // W
    col = pos % W
    masks = []
    for dy, dx in _TAPS:
        cond = None
        if dy == -1:
            cond = row >= 1
        elif dy == 1:
            cond = row <= H - 2
        if dx == -1:
            c2 = col >= 1
            cond = c2 if cond is None else (cond & c2)
        elif dx == 1:
            c2 = col <= W - 2
            cond = c2 if cond is None else (cond & c2)
        masks.append(cond)
    return masks


def _im2col(a_ref, x, ch, cpk, HW, lane_off, masks, roll_sign, W):
    """Write the 9 shifted / border-masked 3x3 taps of x (ch, HW) into the
    shared im2col scratch at lane offset lane_off, tap row-group stride cpk."""
    for t, (dy, dx) in enumerate(_TAPS):
        s = dy * W + dx
        # rolled[p] == x[p + s] (mod HW); wraparound lanes are border-masked.
        v = x if s == 0 else pltpu.roll(x, (-roll_sign * s) % HW, axis=1)
        m = masks[t]
        if m is not None:
            v = jnp.where(m, v, 0.0)
        a_ref[t * cpk:t * cpk + ch, lane_off:lane_off + HW] = v


def _make_kernel(H, W, Nb, cin, cout, cpk, has_bypass, roll_sign):
    HW = H * W
    cmin = min(cin, cout)

    def kernel(*refs):
        if has_bypass:
            x_ref, w1_ref, w2_ref, b2_ref, wb_ref, bb_ref, o_ref, a_ref = refs
        else:
            x_ref, w1_ref, w2_ref, b2_ref, o_ref, a_ref = refs

        # Border masks / iota: once per invocation, reused by both convs.
        masks = _make_masks(H, W)

        # Zero the zero-weight pad rows of every tap group once per grid step.
        # Rows < cmin are always rewritten with fresh tap data below; rows in
        # [cmin, cpk) are only ever multiplied by zero weight rows, they just
        # have to be finite.  (Per-step rather than program_id==0 so every
        # TensorCore's private scratch is initialized under megacore sharding.)
        if cmin < cpk:
            zpad = jnp.zeros((cpk - cmin, Nb * HW), jnp.float32)
            for t in range(9):
                a_ref[t * cpk + cmin:(t + 1) * cpk, :] = zpad

        # x = leaky_relu(InstanceNorm(inp)) + im2col, per image, into the
        # shared scratch at lane offset i*HW.
        for i in range(Nb):
            x_i = x_ref[i].astype(jnp.float32)                 # (cin, HW)
            xn_i = _leaky_relu(_instance_norm(x_i))
            _im2col(a_ref, xn_i, cin, cpk, HW, i * HW, masks, roll_sign, W)

        # conv1 (3x3, pad=1): ONE (cout, 9*cpk) @ (9*cpk, Nb*HW) matmul.
        # conv1's bias is dropped: it is exactly cancelled by the InstanceNorm
        # that follows (per-channel constant only shifts the mean).
        y = jnp.dot(w1_ref[...], a_ref[...], preferred_element_type=jnp.float32)

        # leaky_relu(InstanceNorm(conv1)), per image, then im2col OVER the same
        # scratch (conv1's taps are dead once y is computed).
        for i in range(Nb):
            y_i = y[:, i * HW:(i + 1) * HW]                    # (cout, HW)
            yn_i = _leaky_relu(_instance_norm(y_i))
            _im2col(a_ref, yn_i, cout, cpk, HW, i * HW, masks, roll_sign, W)

        # conv2 + bias: one matmul across all Nb images.
        z = jnp.dot(w2_ref[...], a_ref[...],
                    preferred_element_type=jnp.float32) + b2_ref[...]

        # Bypass on the ORIGINAL input, fused into the per-image output store.
        for i in range(Nb):
            x_i = x_ref[i].astype(jnp.float32)
            if has_bypass:
                byp = jnp.dot(wb_ref[...], x_i,
                              preferred_element_type=jnp.float32) + bb_ref[...]
            else:
                byp = x_i                   # identity bypass (in_ch == out_ch)
            o_ref[i] = (z[:, i * HW:(i + 1) * HW] + byp).astype(o_ref.dtype)

    return kernel


def _pack_conv_w(w_hwio, cpad):
    """(3, 3, ci, co) HWIO -> (co, 9*cpad); zero pad the ci axis so each tap
    occupies an 8-aligned row group of the shared im2col scratch."""
    kh, kw, ci, co = w_hwio.shape
    wt = jnp.transpose(w_hwio, (3, 0, 1, 2))                   # (co, kh, kw, ci)
    if cpad != ci:
        wt = jnp.pad(wt, ((0, 0), (0, 0), (0, 0), (0, cpad - ci)))
    return wt.reshape(co, kh * kw * cpad)


def _choose_nb(N, cpk, HW, cin, cout):
    """Images per grid step: biggest divisor of N that (a) keeps the grid
    length >= 2 so both v7x TensorCores get work and (b) keeps the im2col
    scratch + double-buffered in/out blocks well under scoped VMEM."""
    budget = 24 * 1024 * 1024          # headroom under 32 MiB default scoped VMEM
    per_img = 4 * HW * (9 * cpk + 2 * (cin + cout))
    cap = max(1, budget // max(per_img, 1))
    best = 1
    for nb in range(1, N + 1):
        if N % nb != 0 or nb > cap:
            continue
        if N >= 2 and N // nb < 2:
            continue
        best = nb
    return best


def resblock2d(x_nchw, w1, b1, w2, b2, wb=None, bb=None):
    """ResBlock2d forward.  w1/w2 are HWIO (3,3,ci,co); wb is (cin,cout) or
    None (None => identity bypass, as in the PyTorch module when in_ch==out_ch).
    b1 is accepted for signature parity but never used: it is algebraically
    cancelled by the InstanceNorm that follows conv1."""
    del b1
    N, cin, H, W = x_nchw.shape
    cout = w1.shape[-1]
    HW = H * W
    cpk = max(_round_up(cin, 8), _round_up(cout, 8))
    has_bypass = wb is not None
    roll_sign = _roll_sign()

    Nb = _choose_nb(N, cpk, HW, cin, cout)
    G = N // Nb

    # NCHW -> (N, C, HW): channels on sublanes, spatial on lanes (lane-dense).
    x_l = x_nchw.reshape(N, cin, HW)

    w1_m = _pack_conv_w(w1, cpk)                # (cout, 9*cpk)
    w2_m = _pack_conv_w(w2, cpk)                # (cout, 9*cpk)
    b2_c = b2.reshape(cout, 1)

    kern = _make_kernel(H, W, Nb, cin, cout, cpk, has_bypass, roll_sign)

    in_specs = [
        pl.BlockSpec((Nb, cin, HW), lambda n: (n, 0, 0)),
        pl.BlockSpec((cout, 9 * cpk), lambda n: (0, 0)),
        pl.BlockSpec((cout, 9 * cpk), lambda n: (0, 0)),
        pl.BlockSpec((cout, 1), lambda n: (0, 0)),
    ]
    args = [x_l, w1_m, w2_m, b2_c]
    if has_bypass:
        in_specs += [pl.BlockSpec((cout, cin), lambda n: (0, 0)),
                     pl.BlockSpec((cout, 1), lambda n: (0, 0))]
        args += [jnp.transpose(wb), bb.reshape(cout, 1)]

    flops = 2 * N * HW * (2 * 9 * cpk * cout
                          + (cin * cout if has_bypass else 0))
    bytes_accessed = 4 * (x_l.size + N * cout * HW + w1_m.size + w2_m.size
                          + cout + ((cout * cin + cout) if has_bypass else 0))

    out_l = pl.pallas_call(
        kern,
        out_shape=jax.ShapeDtypeStruct((N, cout, HW), x_nchw.dtype),
        grid_spec=pltpu.PrefetchScalarGridSpec(
            num_scalar_prefetch=0,
            grid=(G,),
            in_specs=in_specs,
            out_specs=pl.BlockSpec((Nb, cout, HW), lambda n: (n, 0, 0)),
            scratch_shapes=[
                # ONE shared im2col scratch, reused by conv1 and conv2.
                pltpu.VMEM((9 * cpk, Nb * HW), jnp.float32),
            ],
        ),
        compiler_params=pltpu.CompilerParams(
            dimension_semantics=("parallel",)),
        cost_estimate=pl.CostEstimate(
            flops=flops,
            transcendentals=N * (cin + cout),
            bytes_accessed=bytes_accessed),
    )(*args)

    # (N, C, HW) -> NCHW (free reshape)
    return out_l.reshape(N, cout, H, W)


def ref_resblock(x, w1, b1, w2, b2, wb=None, bb=None):
    """Pure-JAX reference mirroring the PyTorch forward (includes b1, so the
    b1-cancellation in the kernel is validated against the full computation)."""
    dn = ('NCHW', 'HWIO', 'NCHW')

    def inorm(v):
        mu = v.mean(axis=(2, 3), keepdims=True)
        var = ((v - mu) ** 2).mean(axis=(2, 3), keepdims=True)
        return (v - mu) / jnp.sqrt(var + EPS)

    def lrelu(v):
        return jnp.where(v > 0, v, NEG_SLOPE * v)

    h = lrelu(inorm(x))
    h = lax.conv_general_dilated(h, w1, (1, 1), 'SAME',
                                 dimension_numbers=dn) + b1[None, :, None, None]
    h = lrelu(inorm(h))
    h = lax.conv_general_dilated(h, w2, (1, 1), 'SAME',
                                 dimension_numbers=dn) + b2[None, :, None, None]
    if wb is None:
        byp = x
    else:
        byp = lax.conv_general_dilated(x, wb.reshape(1, 1, *wb.shape), (1, 1),
                                       'SAME', dimension_numbers=dn) \
              + bb[None, :, None, None]
    return h + byp


def _make_params(key, in_ch, out_ch):
    k = jax.random.split(key, 6)
    lim1 = float(np.sqrt(6.0 / (in_ch * 9 + out_ch * 9)))
    b1lim = float(1.0 / np.sqrt(in_ch * 9))
    w1 = jax.random.uniform(k[0], (3, 3, in_ch, out_ch), jnp.float32, -lim1, lim1)
    b1 = jax.random.uniform(k[1], (out_ch,), jnp.float32, -b1lim, b1lim)
    lim2 = float(np.sqrt(6.0 / (out_ch * 9 + out_ch * 9)))
    b2lim = float(1.0 / np.sqrt(out_ch * 9))
    w2 = jax.random.uniform(k[2], (3, 3, out_ch, out_ch), jnp.float32, -lim2, lim2)
    b2 = jax.random.uniform(k[3], (out_ch,), jnp.float32, -b2lim, b2lim)
    if in_ch != out_ch:
        limb = float(1.0 / np.sqrt(in_ch))
        wb = jax.random.uniform(k[4], (in_ch, out_ch), jnp.float32, -limb, limb)
        bb = jax.random.uniform(k[5], (out_ch,), jnp.float32, -limb, limb)
    else:
        wb = bb = None   # empty nn.Sequential -> identity bypass
    return w1, b1, w2, b2, wb, bb


if __name__ == "__main__":
    key = jax.random.PRNGKey(0)
    k_x1, k_p1, k_x2, k_p2 = jax.random.split(key, 4)
    N, H, W = 2, 16, 16

    # Case 1: in_ch != out_ch (learned 1x1 bypass conv, padded conv1 channels)
    in_ch, out_ch = 4, 8
    w1, b1, w2, b2, wb, bb = _make_params(k_p1, in_ch, out_ch)
    x = jax.random.normal(k_x1, (N, in_ch, H, W), jnp.float32)
    out = jax.block_until_ready(resblock2d(x, w1, b1, w2, b2, wb, bb))
    ref = ref_resblock(x, w1, b1, w2, b2, wb, bb)
    np.testing.assert_allclose(np.asarray(out), np.asarray(ref),
                               rtol=1e-4, atol=1e-4)

    # Case 2: in_ch == out_ch (identity bypass: no 1x1 matmul, no wb DMA)
    in_ch = out_ch = 8
    w1, b1, w2, b2, wb, bb = _make_params(k_p2, in_ch, out_ch)
    x = jax.random.normal(k_x2, (N, in_ch, H, W), jnp.float32)
    out = jax.block_until_ready(resblock2d(x, w1, b1, w2, b2))
    ref = ref_resblock(x, w1, b1, w2, b2)
    np.testing.assert_allclose(np.asarray(out), np.asarray(ref),
                               rtol=1e-4, atol=1e-4)

    print("KERNEL_OK")
</pallas_src>

<mosaic_0001>
module attributes {stable_mosaic.version = 11 : i64} {
  func.func @k(%arg0: memref<8x128xf32, #tpu.memory_space<vmem>>, %arg1: memref<8x128xf32, #tpu.memory_space<vmem>>) attributes {dimension_semantics = [], scalar_prefetch = 0 : i64, scratch_operands = 0 : i64, tpu.core_type = #tpu.core_type<tc>} {
    %c0 = arith.constant 0 : index
    %c0_0 = arith.constant 0 : index
    %0 = vector.load %arg0[%c0, %c0_0] : memref<8x128xf32, #tpu.memory_space<vmem>>, vector<8x128xf32>
    %c1_i32 = arith.constant 1 : i32
    %1 = tpu.dynamic_rotate %0 by %c1_i32 dim 1 : vector<8x128xf32>, i32 -> vector<8x128xf32>
    %c0_1 = arith.constant 0 : index
    %c0_2 = arith.constant 0 : index
    %2 = vector.load %arg1[%c0_1, %c0_2] : memref<8x128xf32, #tpu.memory_space<vmem>>, vector<8x128xf32>
    tpu.vector_store %arg1[%c0_1, %c0_2], %1 {strides = array<i32>} : memref<8x128xf32, #tpu.memory_space<vmem>>, vector<8x128xf32>,
    return
  }
}

</mosaic_0001>

<bundles_post_ra>
// kernel: tpu_custom_call.1
= control target key start
LH: loop header
LB: loop body
LE: loop exit
PB: predicated region body
PF: predicated region fallthrough
CT: control target
= control target key end

     0   :  { %6 = vsyncpa [#allocation3], 0  ;;  %s128_s0 = inlined_call_operand.hbm [shape: f32[8,128], index: 0, kind: input, shape index: {}]   ;;  %s129_s1 = inlined_call_operand.hbm [shape: f32[8,128], index: 1, kind: output, shape index: {}]  }
   0x1   :  { %7 = vsyncpa [#allocation4], 0  ;;  %s91_s6 = smov [#allocation2]   ;;  %s43_s10 = scalar_lea.hbm %s128_s0, 128 }
   0x2   :  { %s14_s7 = sshll.u32 %s91_s6, 4  ;;  %p44_p0 = scmp.ne.s32.totalorder %s128_s0, %s43_s10  ;;  %s15_s7 = int_to_ptr.vmem [resolvable:$true] %s14_s7 }
   0x3   :  { %p47_p1 = scmp.lt.u32.totalorder %s43_s10, %s128_s0 }
   0x5   :  { %p49_p2 = pnand %p47_p1, %p44_p0 }
   0x7   :  { %52 = shalt.err (!%p49_p2)
}
   0x8   :  { %s53_s15 = scalar_lea.vmem %s15_s7, 128  ;;  %p58_p4 = scmp.lt.s32.totalorder %s15_s7, %s15_s7 }
   0x9   :  { %p54_p3 = scmp.ne.s32.totalorder %s15_s7, %s53_s15  ;;  %p59_p5 = scmp.lt.s32.totalorder %s53_s15, %s53_s15 }
   0xb   :  { %p60_p6 = por %p59_p5, %p58_p4 }
   0xd   :  { %p61_p7 = pnand %p60_p6, %p54_p3 }
   0xf   :  { %64 = shalt.err (!%p61_p7)
}
  0x10   :  { %17 = dma.hbm_to_vmem [thread:$0]  %s128_s0, 128, %s15_s7, [#allocation3]  }
  0x11   :  { %87 = dma.done.wait [#allocation3], 128  }
  0x12   :  { %88 = vsyncadd [#allocation3], 4294967168  ;;  %v21_v0 = vld [vmem:[#allocation2] sm:$0xff]  ;;  %s92_s18 = smov 1   ;;  %s93_s19 = smov [#allocation5]  }
  0x13   :  { %22 = vrot.lane.b32.xlu0 %v21_v0, %s92_s18  ;;  %s31_s20 = sshll.u32 %s93_s19, 4  ;;  %s32_s20 = int_to_ptr.vmem [resolvable:$true] %s31_s20 }
  0x14   :  { %s65_s21 = scalar_lea.vmem %s32_s20, 128  ;;  %p70_p9 = scmp.lt.s32.totalorder %s32_s20, %s32_s20 }
  0x15   :  { %p66_p8 = scmp.ne.s32.totalorder %s32_s20, %s65_s21  ;;  %p71_p10 = scmp.lt.s32.totalorder %s65_s21, %s65_s21 }
  0x17   :  { %p72_p11 = por %p71_p10, %p70_p9 }
  0x19   :  { %p73_p12 = pnand %p72_p11, %p66_p8 }
  0x85   :  { %v23_v1 = vpop.permute.xlu0 %22 }
  0x86   :  { %24 = vst [vmem:[#allocation5] sm:$0xff] %v23_v1 }
  0x87   :  { %76 = shalt.err (!%p73_p12)
}
  0x88   :  { %s77_s0 = scalar_lea.hbm %s129_s1, 128 }
  0x89   :  { %p78_p13 = scmp.ne.s32.totalorder %s129_s1, %s77_s0  ;;  %p81_p0 = scmp.lt.u32.totalorder %s77_s0, %s129_s1 }
  0x8b   :  { %p83_p1 = pnand %p81_p0, %p78_p13 }
  0x8d   :  { %86 = shalt.err (!%p83_p1)
}
  0x8e   :  { %34 = dma.vmem_to_hbm [thread:$0]  %s32_s20, 128, %s129_s1, [#allocation4]  }
  0x8f   :  { %89 = dma.done.wait [#allocation4], 128  }
  0x90   :  { %90 = vsyncadd [#allocation4], 4294967168 }
  0x91   :  { %38 = vsyncpa [#allocation3], 1 }
  0x92   :  { %39 = vsyncpa [#allocation4], 1 }

</bundles_post_ra>
